<compile_context>
chip_gen: v5e
topology: v5e:2x2
jax: 0.10.0
libtpu: 0.0.40
codegen_flags: <defaults>
</compile_context>

<pallas_src>
import math
from functools import partial

import jax
import jax.numpy as jnp
from jax.experimental import pallas as pl
from jax.experimental.pallas import tpu as pltpu


def integrand_kernel(inp_ref, w1_ref, w2_ref, b2_ref, w3_ref, b3_ref, o_ref):
    """One batch tile of the fused MLP in feature-major ([features, batch_tile])
    layout.  All weights/biases are tiny and fully VMEM-resident (constant
    index_maps -> fetched once)."""
    # --- Linear 1 (concat + bias folded into a single K=in_d+1 dot) + ReLU ---
    z = jnp.dot(w1_ref[...], inp_ref[...],
                preferred_element_type=jnp.float32)           # [h1, tile] f32
    z = jnp.maximum(z, 0.0)

    # --- Linear 2 + ReLU ------------------------------------------------------
    # Cast the activation to the weight dtype (no-op for f32, bf16 MXU path
    # when use_bf16=True); accumulate in f32 either way.
    z = jnp.dot(w2_ref[...], z.astype(w2_ref.dtype),
                preferred_element_type=jnp.float32) + b2_ref[...]
    z = jnp.maximum(z, 0.0)                                   # [h2, tile]

    # --- Linear 3 (out_features == 1): VPU multiply + sublane (XLU) reduce ---
    z = jnp.sum(z * w3_ref[...], axis=0, keepdims=True) + b3_ref[...]  # [1, tile]

    # --- ELU(alpha=1) + 1 -----------------------------------------------------
    # exp arg clamped <= 0: the untaken branch never produces inf.  Difference
    # vs expm1 near z=0 is << 1e-6.
    neg = jnp.exp(jnp.minimum(z, 0.0)) - 1.0
    o_ref[...] = (jnp.where(z > 0.0, z, neg) + 1.0).astype(o_ref.dtype)


def _round_up(n, m):
    return ((n + m - 1) // m) * m


def _tensorcores_per_chip():
    """2 on generations where a Pallas grid marked "parallel" can be sharded
    across TensorCores (megacore v4/v5p, v7x); 1 on v5e/v6e.  Fallback: 1."""
    try:
        kind = jax.devices()[0].device_kind.lower()
    except Exception:
        return 1
    if "lite" in kind or "v5e" in kind or "v6e" in kind:
        return 1
    if any(m in kind for m in ("v4", "v5p", "v7")):
        return 2
    return 1


def integrand_nn(x, h, params, *, tm=8192, use_bf16=False, out_layout="col"):
    """x: [B, x_d], h: [B, h_d].  params are PyTorch-layout (W: [out, in], b: [out]).

    out_layout="col" returns [B, 1] (matches the PyTorch module);
    out_layout="flat" returns [B] and skips the lane->sublane relayout epilogue.
    """
    (w1, b1), (w2, b2), (w3, b3) = params
    B, x_d = x.shape
    h_d = h.shape[1]
    in_d = x_d + h_d
    h1 = w1.shape[0]
    h2 = w2.shape[0]
    assert w1.shape[1] == in_d and w2.shape[1] == h1 and w3.shape == (1, h2)

    x = x.astype(jnp.float32)
    h = h.astype(jnp.float32)

    # ---- batch tiling: big lane-aligned tiles, pad instead of asserting -----
    lane = 128
    B_al = _round_up(max(B, 1), lane)
    tile = min(_round_up(tm, lane), B_al)
    n_tiles = pl.cdiv(B_al, tile)
    if _tensorcores_per_chip() > 1:
        # Shard across both TensorCores: >=2 steps, and an even step count for
        # large batches so neither core gets a lone tail tile.
        if n_tiles == 1 and B_al >= 2 * lane:
            n_tiles = 2
        elif n_tiles > 1 and n_tiles % 2:
            n_tiles += 1
        tile = _round_up(pl.cdiv(B_al, n_tiles), lane)
        n_tiles = pl.cdiv(B_al, tile)
    B_pad = n_tiles * tile
    grid = (n_tiles,)

    mm_dtype = jnp.bfloat16 if use_bf16 else jnp.float32

    # ---- one fused wrapper pass: concat(x, h, ones) -> pad -> transpose -----
    # Produces the feature-major [in_d+1, B_pad] slab (batch on the 128-lane
    # axis); the appended ones row folds b1 into the layer-1 matmul.  Padded
    # batch rows are all-zero (incl. the ones row), so padded lanes stay finite.
    slab = jnp.concatenate([x, h, jnp.ones((B, 1), jnp.float32)], axis=1)
    if B_pad != B:
        slab = jnp.pad(slab, ((0, B_pad - B), (0, 0)))
    slab_t = slab.T.astype(mm_dtype)                     # [in_d+1, B_pad]

    ind1 = in_d + 1
    w1_aug = jnp.concatenate([w1, b1.reshape(h1, 1)], axis=1).astype(mm_dtype)  # [h1, ind1]
    w2_m = w2.astype(mm_dtype)                           # [h2, h1]
    b2c = b2.reshape(h2, 1).astype(jnp.float32)
    w3c = w3.reshape(h2, 1).astype(jnp.float32)          # weight column of the 1-output layer
    b3c = b3.reshape(1, 1).astype(jnp.float32)

    batch_tile = lambda i: (0, i)        # tile along the lane (batch) axis
    whole = lambda i: (0, 0)             # weights: resident, constant block

    flops = 2 * B_pad * (h1 * ind1 + h1 * h2 + h2)
    bytes_accessed = int(
        slab_t.size * slab_t.dtype.itemsize
        + w1_aug.size * w1_aug.dtype.itemsize
        + w2_m.size * w2_m.dtype.itemsize
        + 4 * (b2.size + w3.size + b3.size + B_pad))
    cost = pl.CostEstimate(flops=flops, transcendentals=B_pad,
                           bytes_accessed=bytes_accessed)

    out_t = pl.pallas_call(
        integrand_kernel,
        out_shape=jax.ShapeDtypeStruct((1, B_pad), jnp.float32),
        grid_spec=pltpu.PrefetchScalarGridSpec(
            num_scalar_prefetch=0,
            grid=grid,
            in_specs=[
                pl.BlockSpec((ind1, tile), batch_tile),   # concat(x, h, ones) slab
                pl.BlockSpec((h1, ind1), whole),          # [W1 | b1]
                pl.BlockSpec((h2, h1), whole),            # W2
                pl.BlockSpec((h2, 1), whole),             # b2
                pl.BlockSpec((h2, 1), whole),             # W3 column
                pl.BlockSpec((1, 1), whole),              # b3
            ],
            out_specs=pl.BlockSpec((1, tile), batch_tile),
        ),
        compiler_params=pltpu.CompilerParams(
            dimension_semantics=("parallel",)),
        cost_estimate=cost,
    )(slab_t, w1_aug, w2_m, b2c, w3c, b3c)

    if out_layout == "flat":
        return out_t[0, :B]                  # lane-major, no relayout epilogue
    return out_t[0, :B].reshape(B, 1)        # PyTorch-parity [B, 1]


def make_params(key, in_d, hidden_layers):
    """PyTorch nn.Linear-style params: W: [out, in], b: [out], U(-1/sqrt(in), +)."""
    hs = [in_d] + list(hidden_layers) + [1]
    params = []
    for h0, h1 in zip(hs, hs[1:]):
        key, kw, kb = jax.random.split(key, 3)
        bound = 1.0 / math.sqrt(h0)
        w = jax.random.uniform(kw, (h1, h0), jnp.float32, -bound, bound)
        b = jax.random.uniform(kb, (h1,), jnp.float32, -bound, bound)
        params.append((w, b))
    return params


def integrand_nn_ref(x, h, params):
    """Pure-JAX reference (matches the PyTorch module, incl. expm1-style ELU)."""
    z = jnp.concatenate([x, h], axis=1)
    (w1, b1), (w2, b2), (w3, b3) = params
    z = jnp.maximum(z @ w1.T + b1, 0.0)
    z = jnp.maximum(z @ w2.T + b2, 0.0)
    z = z @ w3.T + b3
    z = jnp.where(z > 0.0, z, jnp.expm1(z))
    return z + 1.0


if __name__ == "__main__":
    # Shapes consistent with the module: in_d = x_dim + h_dim = 1 + 3 = 4,
    # hidden_layers = [32, 32].
    key = jax.random.PRNGKey(0)
    k_x, k_h, k_p = jax.random.split(key, 3)

    x_d, h_d = 1, 3
    hidden_layers = [32, 32]
    in_d = x_d + h_d
    params = make_params(k_p, in_d, hidden_layers)

    # Case 1: small batch (single lane-aligned tile on 1-TC chips).
    B = 16
    x = jax.random.normal(k_x, (B, x_d), jnp.float32)
    h = jax.random.normal(k_h, (B, h_d), jnp.float32)
    out = jax.block_until_ready(integrand_nn(x, h, params))
    ref = integrand_nn_ref(x, h, params)
    assert out.shape == (B, 1), out.shape
    assert jnp.allclose(out, ref, atol=1e-5, rtol=1e-5), \
        f"max abs err {jnp.max(jnp.abs(out - ref))}"

    # Case 2: ragged batch exercising padding (and the 2-TC split on v7x).
    B2 = 300
    x2 = jax.random.normal(jax.random.fold_in(k_x, 1), (B2, x_d), jnp.float32)
    h2 = jax.random.normal(jax.random.fold_in(k_h, 1), (B2, h_d), jnp.float32)
    out2 = jax.block_until_ready(integrand_nn(x2, h2, params))
    ref2 = integrand_nn_ref(x2, h2, params)
    assert out2.shape == (B2, 1), out2.shape
    assert jnp.allclose(out2, ref2, atol=1e-5, rtol=1e-5), \
        f"max abs err {jnp.max(jnp.abs(out2 - ref2))}"

    # Case 3: opt-in bf16 matmul-operand path (f32 accumulate) — loose tolerance.
    out3 = jax.block_until_ready(integrand_nn(x2, h2, params, use_bf16=True,
                                              out_layout="flat"))
    assert out3.shape == (B2,), out3.shape
    assert jnp.allclose(out3, ref2[:, 0], atol=1e-1, rtol=1e-1), \
        f"bf16 max abs err {jnp.max(jnp.abs(out3 - ref2[:, 0]))}"

    print("KERNEL_OK")
</pallas_src>

<mosaic_0001>
module attributes {stable_mosaic.version = 11 : i64} {
  func.func @integrand_kernel(%arg0: i32, %arg1: memref<5x128xf32, #tpu.memory_space<vmem>>, %arg2: memref<32x5xf32, #tpu.memory_space<vmem>>, %arg3: memref<32x32xf32, #tpu.memory_space<vmem>>, %arg4: memref<32x1xf32, #tpu.memory_space<vmem>>, %arg5: memref<32x1xf32, #tpu.memory_space<vmem>>, %arg6: memref<1x1xf32, #tpu.memory_space<vmem>>, %arg7: memref<1x128xf32, #tpu.memory_space<vmem>>) attributes {dimension_semantics = [#tpu.dimension_semantics<parallel>], iteration_bounds = array<i64: 1>, scalar_prefetch = 0 : i64, scratch_operands = 0 : i64, tpu.core_type = #tpu.core_type<tc>, window_params = [{transform_indices = @transform_0, window_bounds = array<i64: 5, 128>}, {pipeline_mode = #tpu.pipeline_mode<synchronous>, transform_indices = @transform_1, window_bounds = array<i64: 32, 5>}, {pipeline_mode = #tpu.pipeline_mode<synchronous>, transform_indices = @transform_2, window_bounds = array<i64: 32, 32>}, {pipeline_mode = #tpu.pipeline_mode<synchronous>, transform_indices = @transform_3, window_bounds = array<i64: 32, 1>}, {pipeline_mode = #tpu.pipeline_mode<synchronous>, transform_indices = @transform_4, window_bounds = array<i64: 32, 1>}, {pipeline_mode = #tpu.pipeline_mode<synchronous>, transform_indices = @transform_5, window_bounds = array<i64: 1, 1>}, {transform_indices = @transform_6, window_bounds = array<i64: 1, 128>}]} {
    %c0 = arith.constant 0 : index
    %c0_0 = arith.constant 0 : index
    %0 = vector.load %arg2[%c0, %c0_0] : memref<32x5xf32, #tpu.memory_space<vmem>>, vector<32x5xf32>
    %c0_1 = arith.constant 0 : index
    %c0_2 = arith.constant 0 : index
    %1 = vector.load %arg1[%c0_1, %c0_2] : memref<5x128xf32, #tpu.memory_space<vmem>>, vector<5x128xf32>
    %cst = arith.constant dense<0.000000e+00> : vector<32x128xf32>
    %2 = tpu.matmul %0, %1, %cst {dimension_numbers = #tpu.dot_dimension_numbers<[1], [0], [0], [1], [0, 0, 1, 1], [], []>} : vector<32x5xf32>, vector<5x128xf32>, vector<32x128xf32> -> vector<32x128xf32>
    %cst_3 = arith.constant 0.000000e+00 : f32
    %3 = vector.broadcast %cst_3 : f32 to vector<32x128xf32>
    %4 = arith.maximumf %2, %3 : vector<32x128xf32>
    %c0_4 = arith.constant 0 : index
    %c0_5 = arith.constant 0 : index
    %5 = vector.load %arg3[%c0_4, %c0_5] : memref<32x32xf32, #tpu.memory_space<vmem>>, vector<32x32xf32>
    %cst_6 = arith.constant dense<0.000000e+00> : vector<32x128xf32>
    %6 = tpu.matmul %5, %4, %cst_6 {dimension_numbers = #tpu.dot_dimension_numbers<[1], [0], [0], [1], [0, 0, 1, 1], [], []>} : vector<32x32xf32>, vector<32x128xf32>, vector<32x128xf32> -> vector<32x128xf32>
    %c0_7 = arith.constant 0 : index
    %c0_8 = arith.constant 0 : index
    %7 = vector.load %arg4[%c0_7, %c0_8] : memref<32x1xf32, #tpu.memory_space<vmem>>, vector<32x1xf32>
    %8 = vector.broadcast %7 : vector<32x1xf32> to vector<32x128xf32>
    %9 = arith.addf %6, %8 : vector<32x128xf32>
    %cst_9 = arith.constant 0.000000e+00 : f32
    %10 = vector.broadcast %cst_9 : f32 to vector<32x128xf32>
    %11 = arith.maximumf %9, %10 : vector<32x128xf32>
    %c0_10 = arith.constant 0 : index
    %c0_11 = arith.constant 0 : index
    %12 = vector.load %arg5[%c0_10, %c0_11] : memref<32x1xf32, #tpu.memory_space<vmem>>, vector<32x1xf32>
    %13 = vector.broadcast %12 : vector<32x1xf32> to vector<32x128xf32>
    %14 = arith.mulf %11, %13 : vector<32x128xf32>
    %cst_12 = arith.constant dense<0.000000e+00> : vector<128xf32>
    %15 = vector.multi_reduction <add>, %14, %cst_12 [0] : vector<32x128xf32> to vector<128xf32>
    %16 = vector.shape_cast %15 : vector<128xf32> to vector<1x128xf32>
    %c0_13 = arith.constant 0 : index
    %c0_14 = arith.constant 0 : index
    %17 = vector.load %arg6[%c0_13, %c0_14] : memref<1x1xf32, #tpu.memory_space<vmem>>, vector<1x1xf32>
    %18 = vector.broadcast %17 : vector<1x1xf32> to vector<1x128xf32>
    %19 = arith.addf %16, %18 : vector<1x128xf32>
    %cst_15 = arith.constant 0.000000e+00 : f32
    %20 = vector.broadcast %cst_15 : f32 to vector<1x128xf32>
    %21 = arith.minimumf %19, %20 : vector<1x128xf32>
    %22 = math.exp %21 : vector<1x128xf32>
    %cst_16 = arith.constant 1.000000e+00 : f32
    %23 = vector.broadcast %cst_16 : f32 to vector<1x128xf32>
    %24 = arith.subf %22, %23 : vector<1x128xf32>
    %cst_17 = arith.constant 0.000000e+00 : f32
    %25 = vector.broadcast %cst_17 : f32 to vector<1x128xf32>
    %26 = arith.cmpf ogt, %19, %25 : vector<1x128xf32>
    %27 = arith.select %26, %19, %24 : vector<1x128xi1>, vector<1x128xf32>
    %cst_18 = arith.constant 1.000000e+00 : f32
    %28 = vector.broadcast %cst_18 : f32 to vector<1x128xf32>
    %29 = arith.addf %27, %28 : vector<1x128xf32>
    %c0_19 = arith.constant 0 : index
    %c0_20 = arith.constant 0 : index
    %30 = vector.load %arg7[%c0_19, %c0_20] : memref<1x128xf32, #tpu.memory_space<vmem>>, vector<1x128xf32>
    tpu.vector_store %arg7[%c0_19, %c0_20], %29 {strides = array<i32>} : memref<1x128xf32, #tpu.memory_space<vmem>>, vector<1x128xf32>,
    return
  }
  func.func @transform_0(%arg0: i32) -> (i32, i32) {
    %c0_i32 = arith.constant 0 : i32
    %c0_i32_0 = arith.constant 0 : i32
    return %c0_i32, %arg0 : i32, i32
  }
  func.func @transform_1(%arg0: i32) -> (i32, i32) {
    %c0_i32 = arith.constant 0 : i32
    %c0_i32_0 = arith.constant 0 : i32
    %c0_i32_1 = arith.constant 0 : i32
    return %c0_i32, %c0_i32_0 : i32, i32
  }
  func.func @transform_2(%arg0: i32) -> (i32, i32) {
    %c0_i32 = arith.constant 0 : i32
    %c0_i32_0 = arith.constant 0 : i32
    %c0_i32_1 = arith.constant 0 : i32
    return %c0_i32, %c0_i32_0 : i32, i32
  }
  func.func @transform_3(%arg0: i32) -> (i32, i32) {
    %c0_i32 = arith.constant 0 : i32
    %c0_i32_0 = arith.constant 0 : i32
    %c0_i32_1 = arith.constant 0 : i32
    return %c0_i32, %c0_i32_0 : i32, i32
  }
  func.func @transform_4(%arg0: i32) -> (i32, i32) {
    %c0_i32 = arith.constant 0 : i32
    %c0_i32_0 = arith.constant 0 : i32
    %c0_i32_1 = arith.constant 0 : i32
    return %c0_i32, %c0_i32_0 : i32, i32
  }
  func.func @transform_5(%arg0: i32) -> (i32, i32) {
    %c0_i32 = arith.constant 0 : i32
    %c0_i32_0 = arith.constant 0 : i32
    %c0_i32_1 = arith.constant 0 : i32
    return %c0_i32, %c0_i32_0 : i32, i32
  }
  func.func @transform_6(%arg0: i32) -> (i32, i32) {
    %c0_i32 = arith.constant 0 : i32
    %c0_i32_0 = arith.constant 0 : i32
    return %c0_i32, %arg0 : i32, i32
  }
}

</mosaic_0001>

<bundles_post_ra>
// kernel: tpu_custom_call.1
= control target key start
LH: loop header
LB: loop body
LE: loop exit
PB: predicated region body
PF: predicated region fallthrough
CT: control target
= control target key end

     0   :  { %s366_s0 = inlined_call_operand.vmem [shape: f32[5,128], index: 0, kind: input, shape index: {}]   ;;  %s367_s1 = inlined_call_operand.vmem [shape: f32[32,5], index: 1, kind: input, shape index: {}]   ;;  %s368_s2 = inlined_call_operand.vmem [shape: f32[32,32], index: 2, kind: input, shape index: {}]   ;;  %s369_s3 = inlined_call_operand.vmem [shape: f32[32,1], index: 3, kind: input, shape index: {}]   ;;  %s370_s4 = inlined_call_operand.vmem [shape: f32[32,1], index: 4, kind: input, shape index: {}]   ;;  %s371_s5 = inlined_call_operand.<no memory space> [shape: f32[1,1], index: 5, kind: input, shape index: {}]   ;;  %s372_s6 = inlined_call_operand.hbm [shape: f32[1,128], index: 6, kind: output, shape index: {}]  }
   0x1   :  { %v11_v0 = vstv %s371_s5 }
   0x2   :  { %12 = vst [vmem:[#allocation2] sm:$0x1] %v11_v0 }
   0x3   :  { %v30_v1 = vld [vmem:[%s366_s0] sm:$0x1f]  ;;  %vm44_vm0 = vcmask 1044480   ;;  %v27_v2 = vld [vmem:[%s367_s1 + $0x8] sm:$0xff]  ;;  %vm31_vm1 = vcmask 39936  }
   0x4   :  { %234 = vmatpush.msk.msra.mxu3 %vm44_vm0, %v30_v1  ;;  %224 = vmatpush.msk.msra.mxu0 %vm44_vm0, %v30_v1  ;;  %v26_v3 = vld [vmem:[%s367_s1] sm:$0xff] }
   0x5   :  { %13 = vsyncpa [#allocation4], 0  ;;  %226 = vmatmul.msk.f32.vlgmr.msra.gmra.mxu3 %vm31_vm1, %v27_v2  ;;  %225 = vmatmul.msk.f32.vlgmr.msra.gmra.mxu0 %vm31_vm1, %v26_v3  ;;  %v28_v4 = vld [vmem:[%s367_s1 + $0x10] sm:$0xff]  ;;  %v29_v5 = vld [vmem:[%s367_s1 + $0x18] sm:$0xff]  ;;  %v272_v7 = vmov 0   ;;  %vm109_vm2 = vcmask 261120  }
   0x6   :  { %v85_v6 = vld [vmem:[%s369_s3] sm:$0xff]  ;;  %241 = vset.pattern.permute.xlu0 %v272_v7  ;;  %242 = vset.pattern.permute.xlu1 %v272_v7  ;;  %v87_v8 = vld [vmem:[%s369_s3 + $0x10] sm:$0xff]  ;;  %v86_v9 = vld [vmem:[%s369_s3 + $0x8] sm:$0xff]  ;;  %s215_s0 = sshll.u32 %s372_s6, 4  ;;  %s216_s0 = int_to_ptr.hbm [resolvable:$true] %s215_s0 }
   0x7   :  { %91 = vperm.xlu0 %241, %v85_v6   ;;  %243 = vset.pattern.permute.xlu2 %v272_v7  ;;  %v88_v10 = vld [vmem:[%s369_s3 + $0x18] sm:$0xff]  ;;  %v157_v12 = vld [vmem:[%s370_s4 + $0x10] sm:$0xff]  ;;  %v155_v13 = vld [vmem:[%s370_s4] sm:$0xff] }
   0x8   :  { %101 = vperm.xlu1 %242, %v87_v8   ;;  %v158_v14 = vld [vmem:[%s370_s4 + $0x18] sm:$0xff]  ;;  %161 = vperm.xlu2 %243, %v155_v13   ;;  %v156_v16 = vld [vmem:[%s370_s4 + $0x8] sm:$0xff]  ;;  %v81_v24 = vld [vmem:[%s368_s2] sm:$0xff] }
   0x9   :  { %v192_v19 = vld [vmem:[#allocation2] sm:$0x1]  ;;  %v83_v25 = vld [vmem:[%s368_s2 + $0x10] sm:$0xff]  ;;  %v82_v26 = vld [vmem:[%s368_s2 + $0x8] sm:$0xff] }
   0xa   :  { %v84_v27 = vld [vmem:[%s368_s2 + $0x18] sm:$0xff]  ;;  %s273_s2 = smov [#allocation3]  }
   0xb   :  { %s213_s28 = sshll.u32 %s273_s2, 4  ;;  %s214_s28 = int_to_ptr.vmem [resolvable:$true] %s213_s28 }
   0xd   :  { %227 = vmatmul.msk.f32.gmra.mxu3 %vm31_vm1, %v28_v4 }
   0xf   :  { %96 = vperm.xlu0 %241, %v86_v9  }
  0x10   :  { %106 = vperm.xlu1 %242, %v88_v10   ;;  %166 = vperm.xlu2 %243, %v156_v16  }
  0x15   :  { %228 = vmatmul.msk.f32.gmra.mxu3 %vm31_vm1, %v29_v5 }
  0x17   :  { %171 = vperm.xlu0 %241, %v157_v12  }
  0x18   :  { %176 = vperm.xlu1 %242, %v158_v14   ;;  %195 = vperm.xlu2 %243, %v192_v19  }
  0x62   :  { %v162_v31 = vpop.permute.xlu2 %161 }
  0x6a   :  { %v167_v41 = vpop.permute.xlu2 %166 }
  0x72   :  { %v196_v59 = vpop.permute.xlu2 %195 }
  0x73   :  { %v198_v61 = vperm.slane %v196_v59, 0 }
  0x79   :  { %v92_v28 = vpop.permute.xlu0 %91 }
  0x7a   :  { %v102_v29 = vpop.permute.xlu1 %101 }
  0x81   :  { %v97_v33 = vpop.permute.xlu0 %96 }
  0x82   :  { %v65_v20 = vpop.f32.mrf.mxu0  ;;  %v107_v35 = vpop.permute.xlu1 %106 }
  0x83   :  { %v77_v23 = vmax.f32 %v65_v20, 0.0 }
  0x88   :  { %v68_v11 = vpop.f32.mrf.mxu3 }
  0x89   :  { %v78_v22 = vmax.f32 %v68_v11, 0.0  ;;  %v172_v48 = vpop.permute.xlu0 %171 }
  0x8a   :  { %v177_v51 = vpop.permute.xlu1 %176 }
  0x90   :  { %v71_v15 = vpop.f32.mrf.mxu3 }
  0x91   :  { %v79_v21 = vmax.f32 %v71_v15, 0.0 }
  0x98   :  { %v74_v17 = vpop.f32.mrf.mxu3 }
  0x99   :  { %v80_v18 = vmax.f32 %v74_v17, 0.0 }
  0x9b   :  { %134 = vmatpush.msra.mxu1 %v80_v18  ;;  %235 = vmatpush.msra.mxu2 %v80_v18 }
  0x9d   :  { %135 = vmatpush.msra.mxu1 %v79_v21  ;;  %236 = vmatpush.msra.mxu2 %v79_v21 }
  0x9f   :  { %136 = vmatpush.msra.mxu1 %v78_v22  ;;  %237 = vmatpush.msra.mxu2 %v78_v22 }
  0xa1   :  { %137 = vmatpush.msra.mxu1 %v77_v23  ;;  %238 = vmatpush.msra.mxu2 %v77_v23 }
  0xa2   :  { %229 = vmatmul.msk.f32.vlgmr.msra.gmra.mxu1 %vm109_vm2, %v81_v24  ;;  %231 = vmatmul.msk.f32.vlgmr.msra.gmra.mxu2 %vm109_vm2, %v83_v25 }
  0xaa   :  { %230 = vmatmul.msk.f32.gmra.mxu1 %vm109_vm2, %v82_v26  ;;  %232 = vmatmul.msk.f32.gmra.mxu2 %vm109_vm2, %v84_v27 }
 0x11f   :  { %v139_v30 = vpop.f32.mrf.mxu1 }
 0x120   :  { %v140_v32 = vadd.f32 %v139_v30, %v92_v28 }
 0x122   :  { %v151_v37 = vmax.f32 %v140_v32, 0.0 }
 0x124   :  { %v179_v42 = vmul.f32 %v162_v31, %v151_v37 }
 0x125   :  { %v145_v34 = vpop.f32.mrf.mxu2 }
 0x126   :  { %v146_v38 = vadd.f32 %v145_v34, %v102_v29 }
 0x127   :  { %v142_v36 = vpop.f32.mrf.mxu1 }
 0x128   :  { %v143_v39 = vadd.f32 %v142_v36, %v97_v33  ;;  %v153_v43 = vmax.f32 %v146_v38, 0.0 }
 0x12a   :  { %v152_v40 = vmax.f32 %v143_v39, 0.0  ;;  %v181_v49 = vmul.f32 %v172_v48, %v153_v43 }
 0x12c   :  { %v180_v44 = vmul.f32 %v167_v41, %v152_v40 }
 0x12d   :  { %v148_v45 = vpop.f32.mrf.mxu2 }
 0x12e   :  { %v183_v46 = vadd.f32 %v180_v44, %v179_v42  ;;  %v149_v47 = vadd.f32 %v148_v45, %v107_v35 }
 0x130   :  { %v154_v50 = vmax.f32 %v149_v47, 0.0  ;;  %v184_v53 = vadd.f32 %v183_v46, %v181_v49 }
 0x132   :  { %v182_v52 = vmul.f32 %v177_v51, %v154_v50 }
 0x134   :  { %v185_v54 = vadd.f32 %v184_v53, %v182_v52 }
 0x136   :  { %v186_v55 = vrot.slane %v185_v54, 4 }
 0x138   :  { %v187_v56 = vadd.f32 %v186_v55, %v185_v54 }
 0x13a   :  { %v188_v57 = vrot.slane %v187_v56, 2 }
 0x13c   :  { %v189_v58 = vadd.f32 %v188_v57, %v187_v56 }
 0x13e   :  { %v190_v60 = vrot.slane %v189_v58, 1 }
 0x140   :  { %v191_v62 = vadd.f32 %v190_v60, %v189_v58 }
 0x142   :  { %v199_v63 = vadd.f32 %v198_v61, %v191_v62 }
 0x144   :  { %v200_v0 = vmin.f32 %v199_v63, 0.0  ;;  %vm204_vm3 = vcmp.gt.f32.partialorder %v199_v63, 0.0 }
 0x146   :  { %v201_v1 = vmul.f32 1.442695, %v200_v0 }
 0x148   :  { %244 = vpow2.f32 %v201_v1 }
 0x14e   :  { %v245_v2 = vpop.eup %244 }
 0x14f   :  { %v233_v3 = vadd.f32 -1.0, %v245_v2 }
 0x151   :  { %v205_v4 = vsel %vm204_vm3, %v199_v63, %v233_v3 }
 0x152   :  { %v206_v5 = vadd.f32 1.0, %v205_v4 }
 0x154   :  { %207 = vst [vmem:[#allocation3] sm:$0x1] %v206_v5 }
 0x155   :  { %218 = dma.vmem_to_hbm [thread:$0]  %s214_s28, 16, %s216_s0, [#allocation4]  }
 0x156   :  { %270 = dma.done.wait [#allocation4], 16  }
 0x157   :  { %271 = vsyncadd [#allocation4], 4294967280 }
 0x158   :  { %223 = vsyncpa [#allocation4], 1 }

</bundles_post_ra>
